<compile_context>
chip_gen: v5e
topology: v5e:2x2
jax: 0.10.0
libtpu: 0.0.40
codegen_flags: <defaults>
</compile_context>

<pallas_src>
import functools

import jax
import jax.numpy as jnp
from jax.experimental import pallas as pl
from jax.experimental.pallas import tpu as pltpu


# ---------------------------------------------------------------------------
# Kernels
# ---------------------------------------------------------------------------

def _fc_kernel_bias(x_ref, w_ref, b_ref, o_ref, acc_ref):
    # x_ref: (tm, tk), w_ref: (tk, tn), b_ref: (1, tn), o_ref: (tm, tn)
    k = pl.program_id(2)

    @pl.when(k == 0)
    def _():
        # Fold the bias into the accumulator init: epilogue is then just a cast.
        acc_ref[...] = jnp.broadcast_to(
            b_ref[...].astype(jnp.float32), acc_ref.shape)

    acc_ref[...] += jnp.dot(
        x_ref[...], w_ref[...], preferred_element_type=jnp.float32)

    @pl.when(k == pl.num_programs(2) - 1)
    def _():
        o_ref[...] = acc_ref[...].astype(o_ref.dtype)


def _fc_kernel_nobias(x_ref, w_ref, o_ref, acc_ref):
    k = pl.program_id(2)

    @pl.when(k == 0)
    def _():
        acc_ref[...] = jnp.zeros_like(acc_ref)

    acc_ref[...] += jnp.dot(
        x_ref[...], w_ref[...], preferred_element_type=jnp.float32)

    @pl.when(k == pl.num_programs(2) - 1)
    def _():
        o_ref[...] = acc_ref[...].astype(o_ref.dtype)


# ---------------------------------------------------------------------------
# Tile selection helpers
# ---------------------------------------------------------------------------

def _round_up(x, m):
    return ((x + m - 1) // m) * m


def _cdiv(a, b):
    return (a + b - 1) // b


def _sublane_align(dtype):
    isz = jnp.dtype(dtype).itemsize
    if isz >= 4:
        return 8
    if isz == 2:
        return 16
    return 32


def _vmem_capacity_bytes():
    """Per-TensorCore VMEM capacity; conservative 64 MiB fallback (v7x)."""
    try:
        info = pltpu.get_tpu_info()
        cap = getattr(info, "vmem_capacity_bytes", None)
        if cap:
            return int(cap)
    except Exception:
        pass
    return 64 * 1024 * 1024


def _pick_reduction_tile(K, target, align=128):
    """K-axis tile.  Returns (tk, needs_zero_pad).

    The reduction axis must NOT be ragged (garbage would be accumulated into
    valid outputs), so we pick the largest `align`-multiple <= target that
    exactly divides K, or fall back to the target tile plus explicit zero
    padding of K (numerically exact) when no clean divisor exists.
    """
    if K <= target:
        return K, False
    t = (target // align) * align
    while t >= align:
        if K % t == 0:
            return t, False
        t -= align
    return (target // align) * align, True


# ---------------------------------------------------------------------------
# Wrapper
# ---------------------------------------------------------------------------

def fully_connected(x, w, b=None, *,
                    tm_target=512, tn_target=1024, tk_target=1024):
    """y = x @ w (+ b).  x: (M, K), w: (K, N) (= torch W^T), b: (N,) or None."""
    assert x.ndim == 2, (
        "input tensor should have a length of 2 but its instead {}".format(x.shape))
    M, K = x.shape
    Kw, N = w.shape
    assert K == Kw, f"weight in_features {Kw} != input features {K}"

    out_dtype = x.dtype
    xb = jnp.dtype(x.dtype).itemsize
    wb = jnp.dtype(w.dtype).itemsize
    ob = jnp.dtype(out_dtype).itemsize
    sub = _sublane_align(x.dtype)

    # --- M tile: full dim when small, aligned target otherwise (ragged OK) ---
    tm = M if M <= tm_target else (tm_target // sub) * sub
    # --- N tile: full dim when small, 128-multiple target otherwise --------
    tn = N if N <= tn_target else (tn_target // 128) * 128
    # Megacore: if the whole batch fits one M tile, split N so the "parallel"
    # j axis has >=2 steps and the second TensorCore is not idle.
    if _cdiv(M, tm) == 1 and N >= 512:
        tn = min(tn, _round_up(_cdiv(N, 2), 256))
    # --- K tile: exact divisor, or explicit zero padding --------------------
    tk, pad_k_needed = _pick_reduction_tile(K, tk_target)

    # --- VMEM budget (generation aware) -------------------------------------
    vmem_cap = _vmem_capacity_bytes()
    tile_budget = int(vmem_cap * 0.6)

    def _footprint(tm_, tn_, tk_):
        return (2 * (tm_ * tk_ * xb + tk_ * tn_ * wb)   # double-buffered inputs
                + 2 * tm_ * tn_ * ob                    # double-buffered output
                + tm_ * tn_ * 4                         # f32 accumulator
                + 2 * tn_ * wb)                         # bias (noise)

    # Safety net: shrink tiles if user-supplied targets blow the budget.
    while _footprint(tm, tn, tk) > tile_budget:
        if tn >= 256 and tn % 256 == 0:
            tn //= 2
        elif tm >= 2 * sub and tm % (2 * sub) == 0:
            tm //= 2
        elif (tk >= 256 and tk % 256 == 0
              and (pad_k_needed or K % (tk // 2) == 0)):
            tk //= 2
        else:
            break

    # Zero-pad K only in the pathological no-divisor case (exact numerics).
    x_k, w_k, K_p = x, w, K
    if pad_k_needed:
        K_p = _round_up(K, tk)
        x_k = jnp.pad(x, ((0, 0), (0, K_p - K)))
        w_k = jnp.pad(w, ((0, K_p - K), (0, 0)))

    grid = (_cdiv(M, tm), _cdiv(N, tn), K_p // tk)

    has_bias = b is not None
    footprint = _footprint(tm, tn, tk)
    vmem_limit = int(min(vmem_cap - (4 << 20),
                         max(32 << 20, footprint + (16 << 20))))

    compiler_params = pltpu.CompilerParams(
        dimension_semantics=("parallel", "parallel", "arbitrary"),
        vmem_limit_bytes=vmem_limit,
    )
    cost = pl.CostEstimate(
        flops=2 * M * N * K,
        transcendentals=0,
        bytes_accessed=int(M * K * xb + K * N * wb + M * N * ob
                           + (N * wb if has_bias else 0)),
    )

    x_spec = pl.BlockSpec((tm, tk), lambda i, j, k: (i, k))
    w_spec = pl.BlockSpec((tk, tn), lambda i, j, k: (k, j))
    o_spec = pl.BlockSpec((tm, tn), lambda i, j, k: (i, j))
    scratch = [pltpu.VMEM((tm, tn), jnp.float32)]
    out_shape = jax.ShapeDtypeStruct((M, N), out_dtype)

    if has_bias:
        b2 = b.reshape(1, N)
        b_spec = pl.BlockSpec((1, tn), lambda i, j, k: (0, j))
        return pl.pallas_call(
            _fc_kernel_bias,
            out_shape=out_shape,
            grid_spec=pltpu.PrefetchScalarGridSpec(
                num_scalar_prefetch=0,
                grid=grid,
                in_specs=[x_spec, w_spec, b_spec],
                out_specs=o_spec,
                scratch_shapes=scratch),
            compiler_params=compiler_params,
            cost_estimate=cost,
        )(x_k, w_k, b2)

    return pl.pallas_call(
        _fc_kernel_nobias,
        out_shape=out_shape,
        grid_spec=pltpu.PrefetchScalarGridSpec(
            num_scalar_prefetch=0,
            grid=grid,
            in_specs=[x_spec, w_spec],
            out_specs=o_spec,
            scratch_shapes=scratch),
        compiler_params=compiler_params,
        cost_estimate=cost,
    )(x_k, w_k)


# ---------------------------------------------------------------------------
# Reference + demo
# ---------------------------------------------------------------------------

def _reference(x, w, b):
    out = jnp.dot(x, w, preferred_element_type=jnp.float32)
    if b is not None:
        out = out + b.astype(jnp.float32)
    return out.astype(x.dtype)


if __name__ == "__main__":
    key = jax.random.PRNGKey(0)
    kx, kw, kb = jax.random.split(key, 3)

    batch = 2          # forward() requires a rank-2 input (B, in_features)
    in_features = 32
    num_filters = 4    # nn.Linear out_features

    x = jax.random.normal(kx, (batch, in_features), dtype=jnp.float32)
    # Weight stored as (in_features, out_features) == torch W^T.
    w = jax.random.normal(kw, (in_features, num_filters), dtype=jnp.float32) * 0.1
    b = jax.random.normal(kb, (num_filters,), dtype=jnp.float32)

    # With bias (the module's bias=True configuration).
    out = jax.block_until_ready(jax.jit(fully_connected)(x, w, b))
    ref = _reference(x, w, b)
    assert out.shape == (batch, num_filters), f"bad shape {out.shape}"
    assert jnp.allclose(out, ref, atol=1e-5, rtol=1e-5), "mismatch vs reference (bias)"

    # Without bias (bias=False configuration).
    out_nb = jax.block_until_ready(jax.jit(fully_connected)(x, w, None))
    ref_nb = _reference(x, w, None)
    assert jnp.allclose(out_nb, ref_nb, atol=1e-5, rtol=1e-5), "mismatch vs reference (no bias)"

    print("KERNEL_OK")
</pallas_src>

<mosaic_0001>
module attributes {stable_mosaic.version = 11 : i64} {
  func.func @_fc_kernel_bias(%arg0: i32, %arg1: i32, %arg2: i32, %arg3: memref<2x32xf32, #tpu.memory_space<vmem>>, %arg4: memref<32x4xf32, #tpu.memory_space<vmem>>, %arg5: memref<1x4xf32, #tpu.memory_space<vmem>>, %arg6: memref<2x4xf32, #tpu.memory_space<vmem>>, %arg7: memref<2x4xf32, #tpu.memory_space<vmem>>) attributes {dimension_semantics = [#tpu.dimension_semantics<parallel>, #tpu.dimension_semantics<parallel>, #tpu.dimension_semantics<arbitrary>], iteration_bounds = array<i64: 1, 1, 1>, scalar_prefetch = 0 : i64, scratch_operands = 1 : i64, tpu.core_type = #tpu.core_type<tc>, window_params = [{transform_indices = @transform_0, window_bounds = array<i64: 2, 32>}, {transform_indices = @transform_1, window_bounds = array<i64: 32, 4>}, {transform_indices = @transform_2, window_bounds = array<i64: 1, 4>}, {transform_indices = @transform_3, window_bounds = array<i64: 2, 4>}]} {
    %c0_i32 = arith.constant 0 : i32
    %0 = arith.cmpi eq, %arg2, %c0_i32 : i32
    %1 = arith.extui %0 : i1 to i32
    %c0_i32_0 = arith.constant 0 : i32
    %2 = arith.cmpi ne, %1, %c0_i32_0 : i32
    scf.if %2 {
      %c0_10 = arith.constant 0 : index
      %c0_11 = arith.constant 0 : index
      %12 = vector.load %arg5[%c0_10, %c0_11] : memref<1x4xf32, #tpu.memory_space<vmem>>, vector<1x4xf32>
      %13 = vector.shape_cast %12 : vector<1x4xf32> to vector<1x4xf32>
      %14 = vector.broadcast %13 : vector<1x4xf32> to vector<2x4xf32>
      %c0_12 = arith.constant 0 : index
      %c0_13 = arith.constant 0 : index
      %15 = vector.load %arg7[%c0_12, %c0_13] : memref<2x4xf32, #tpu.memory_space<vmem>>, vector<2x4xf32>
      tpu.vector_store %arg7[%c0_12, %c0_13], %14 {strides = array<i32>} : memref<2x4xf32, #tpu.memory_space<vmem>>, vector<2x4xf32>,
    } else {
    }
    %c0 = arith.constant 0 : index
    %c0_1 = arith.constant 0 : index
    %3 = vector.load %arg7[%c0, %c0_1] : memref<2x4xf32, #tpu.memory_space<vmem>>, vector<2x4xf32>
    %c0_2 = arith.constant 0 : index
    %c0_3 = arith.constant 0 : index
    %4 = vector.load %arg3[%c0_2, %c0_3] : memref<2x32xf32, #tpu.memory_space<vmem>>, vector<2x32xf32>
    %c0_4 = arith.constant 0 : index
    %c0_5 = arith.constant 0 : index
    %5 = vector.load %arg4[%c0_4, %c0_5] : memref<32x4xf32, #tpu.memory_space<vmem>>, vector<32x4xf32>
    %cst = arith.constant dense<0.000000e+00> : vector<2x4xf32>
    %6 = tpu.matmul %4, %5, %cst {dimension_numbers = #tpu.dot_dimension_numbers<[1], [0], [0], [1], [0, 0, 1, 1], [], []>} : vector<2x32xf32>, vector<32x4xf32>, vector<2x4xf32> -> vector<2x4xf32>
    %7 = arith.addf %3, %6 : vector<2x4xf32>
    %c0_6 = arith.constant 0 : index
    %c0_7 = arith.constant 0 : index
    %8 = vector.load %arg7[%c0_6, %c0_7] : memref<2x4xf32, #tpu.memory_space<vmem>>, vector<2x4xf32>
    tpu.vector_store %arg7[%c0_6, %c0_7], %7 {strides = array<i32>} : memref<2x4xf32, #tpu.memory_space<vmem>>, vector<2x4xf32>,
    %c0_i32_8 = arith.constant 0 : i32
    %9 = arith.cmpi eq, %arg2, %c0_i32_8 : i32
    %10 = arith.extui %9 : i1 to i32
    %c0_i32_9 = arith.constant 0 : i32
    %11 = arith.cmpi ne, %10, %c0_i32_9 : i32
    scf.if %11 {
      %c0_10 = arith.constant 0 : index
      %c0_11 = arith.constant 0 : index
      %12 = vector.load %arg7[%c0_10, %c0_11] : memref<2x4xf32, #tpu.memory_space<vmem>>, vector<2x4xf32>
      %c0_12 = arith.constant 0 : index
      %c0_13 = arith.constant 0 : index
      %13 = vector.load %arg6[%c0_12, %c0_13] : memref<2x4xf32, #tpu.memory_space<vmem>>, vector<2x4xf32>
      tpu.vector_store %arg6[%c0_12, %c0_13], %12 {strides = array<i32>} : memref<2x4xf32, #tpu.memory_space<vmem>>, vector<2x4xf32>,
    } else {
    }
    return
  }
  func.func @transform_0(%arg0: i32, %arg1: i32, %arg2: i32) -> (i32, i32) {
    %c0_i32 = arith.constant 0 : i32
    return %arg0, %arg2 : i32, i32
  }
  func.func @transform_1(%arg0: i32, %arg1: i32, %arg2: i32) -> (i32, i32) {
    %c0_i32 = arith.constant 0 : i32
    return %arg2, %arg1 : i32, i32
  }
  func.func @transform_2(%arg0: i32, %arg1: i32, %arg2: i32) -> (i32, i32) {
    %c0_i32 = arith.constant 0 : i32
    %c0_i32_0 = arith.constant 0 : i32
    return %c0_i32, %arg1 : i32, i32
  }
  func.func @transform_3(%arg0: i32, %arg1: i32, %arg2: i32) -> (i32, i32) {
    %c0_i32 = arith.constant 0 : i32
    return %arg0, %arg1 : i32, i32
  }
}

</mosaic_0001>

<bundles_post_ra>
// kernel: fully_connected.1
= control target key start
LH: loop header
LB: loop body
LE: loop exit
PB: predicated region body
PF: predicated region fallthrough
CT: control target
= control target key end

     0   :  { %vm23_vm0 = vcmask 25600   ;;  %s153_s0 = inlined_call_operand.vmem [shape: f32[2,32], index: 0, kind: input, shape index: {}]   ;;  %s154_s1 = inlined_call_operand.vmem [shape: f32[32,4], index: 1, kind: input, shape index: {}]   ;;  %s155_s2 = inlined_call_operand.vmem [shape: f32[1,4], index: 2, kind: input, shape index: {}]   ;;  %s156_s3 = inlined_call_operand.hbm [shape: f32[2,4], index: 3, kind: output, shape index: {}]  }
   0x1   :  { %v30_v0 = vld [vmem:[%s154_s1 + $0x18] sm:$0xff]  ;;  %v29_v1 = vld [vmem:[%s154_s1 + $0x10] sm:$0xff]  ;;  %v28_v2 = vld [vmem:[%s154_s1 + $0x8] sm:$0xff] }
   0x2   :  { %47 = vmatpush.msra.mxu0 %v30_v0  ;;  %v81_v3 = vld [vmem:[%s155_s2] ss:$0 sm:$0xff] }
   0x3   :  { %8 = vsyncpa [#allocation4], 0  ;;  %v27_v4 = vld [vmem:[%s154_s1] sm:$0xff]  ;;  %24 = vst.msk [vmem:[#allocation2] sm:$0x3] %vm23_vm0, %v81_v3  ;;  %vm31_vm1 = vcmask 261120  }
   0x4   :  { %48 = vmatpush.msra.mxu0 %v29_v1  ;;  %v26_v5 = vld [vmem:[%s153_s0] sm:$0x3]  ;;  %s108_s2 = smov [#allocation3]   ;;  %s70_s1 = sshll.u32 %s156_s3, 4  ;;  %s71_s1 = int_to_ptr.hbm [resolvable:$true] %s70_s1 }
   0x5   :  { %s68_s24 = sshll.u32 %s108_s2, 4  ;;  %s69_s24 = int_to_ptr.vmem [resolvable:$true] %s68_s24 }
   0x6   :  { %49 = vmatpush.msra.mxu0 %v28_v2 }
   0x8   :  { %50 = vmatpush.msra.mxu0 %v27_v4 }
   0x9   :  { %79 = vmatmul.msk.f32.vlgmr.msra.gmra.mxu0 %vm31_vm1, %v26_v5 }
   0xa   :  { %v25_v6 = vld [vmem:[#allocation2] sm:$0x3] }
  0x86   :  { %v52_v7 = vpop.f32.mrf.mxu0 }
  0x87   :  { %v55_v8 = vadd.f32 %v52_v7, %v25_v6 }
  0x89   :  { %57 = vst.msk [vmem:[#allocation2] sm:$0x3] %vm23_vm0, %v55_v8 }
  0x90   :  { %v61_v9 = vld [vmem:[#allocation2] sm:$0x3] }
  0x91   :  { %62 = vst.msk [vmem:[#allocation3] sm:$0x3] %vm23_vm0, %v61_v9 }
  0x92   :  { %73 = dma.vmem_to_hbm [thread:$0]  %s69_s24, 32, %s71_s1, [#allocation4]  }
  0x93   :  { %106 = dma.done.wait [#allocation4], 32  }
  0x94   :  { %107 = vsyncadd [#allocation4], 4294967264 }
  0x95   :  { %78 = vsyncpa [#allocation4], 1 }

</bundles_post_ra>
